<compile_context>
chip_gen: v5e
topology: v5e:2x2
jax: 0.10.0
libtpu: 0.0.40
codegen_flags: <defaults>
</compile_context>

<pallas_src>
import jax
import jax.numpy as jnp
from jax.experimental import pallas as pl
from jax.experimental.pallas import tpu as pltpu


# ---------------------------------------------------------------------------
# Kernel: per-point row gather (manual double-buffered DMA from HBM) +
#         bilinear combine, 128 points per grid step, lane-dense output.
# ---------------------------------------------------------------------------
def _gather_interp_kernel(idx_ref, wts_ref, fm_hbm, out_ref, buf, sem):
    # idx_ref : SMEM int32 (3, N_pad)   rows: [row_start, x1, x2]
    # wts_ref : SMEM f32   (4, N_pad)   rows: [wa1, wa2, wb1, wb2]
    # fm_hbm  : HBM  f32   (B*Hp, Ce, Wp_pad)   [(b*Hp + y), channel, x]
    # out_ref : VMEM f32   (Ce, tile)   lane-dense per-tile output block
    # buf     : VMEM f32   (2, 2, Ce, Wp_pad)   [slot, window-row, channel, x]
    # sem     : DMA semaphores (2,)
    tile = out_ref.shape[1]
    wp = buf.shape[3]
    t = pl.program_id(0)
    base = t * tile

    def start_fetch(i, slot):
        r0 = idx_ref[0, base + i]                    # clamped 2-row window start
        pltpu.make_async_copy(fm_hbm.at[pl.ds(r0, 2)], buf.at[slot],
                              sem.at[slot]).start()

    def wait_fetch(slot):
        pltpu.make_async_copy(fm_hbm.at[pl.ds(0, 2)], buf.at[slot],
                              sem.at[slot]).wait()

    start_fetch(0, 0)                                # prime slot 0
    out_ref[...] = jnp.zeros_like(out_ref)

    lane = jax.lax.broadcasted_iota(jnp.int32, (1, wp), 1)
    out_lane = jax.lax.broadcasted_iota(jnp.int32, (1, tile), 1)

    @pl.loop(0, tile)
    def _(i):
        slot = i & 1
        n = base + i
        # scalar reads (SMEM) for this point
        x1 = idx_ref[1, n]
        x2 = idx_ref[2, n]
        wa1 = wts_ref[0, n]
        wa2 = wts_ref[1, n]
        wb1 = wts_ref[2, n]
        wb2 = wts_ref[3, n]

        wait_fetch(slot)

        @pl.when(i + 1 < tile)
        def _():
            start_fetch(i + 1, 1 - slot)             # prefetch next point

        pair = buf[slot]                             # (2, Ce, wp) fetched rows
        oh1 = (lane == x1).astype(jnp.float32)       # one-hot over x == x1
        oh2 = (lane == x2).astype(jnp.float32)       # one-hot over x == x2
        w_row0 = wa1 * oh1 + wa2 * oh2               # (1, wp) weights, window row 0
        w_row1 = wb1 * oh1 + wb2 * oh2               # (1, wp) weights, window row 1
        v = pair[0] * w_row0 + pair[1] * w_row1      # (Ce, wp)
        s = jnp.sum(v, axis=1, keepdims=True)        # (Ce, 1) interpolated features
        place = (out_lane == i).astype(jnp.float32)  # (1, tile) column one-hot
        out_ref[...] += s * place


# ---------------------------------------------------------------------------
# Wrapper: coordinate transform + index/weight prep (plain JAX glue, fused by
# XLA) and the Pallas gather/interp call.
# ---------------------------------------------------------------------------
def bilinear_interpolation(episode_idx, sequence, feature_map, oom_val, *,
                           tile=128):
    A, Td, _ = sequence.shape
    B, Ce, H, W = feature_map.shape
    Hp, Wp = H + 2, W + 2                     # constant-padded scene (102)
    Wp_pad = ((Wp + 127) // 128) * 128        # lane-pad x to a multiple of 128
    N = A * Td
    n_tiles = max(1, -(-N // tile))
    N_pad = n_tiles * tile

    sequence = sequence.astype(jnp.float32)
    feature_map = feature_map.astype(jnp.float32)

    # --- coordinate transform (2nd module output) ---------------------------
    sequence_mapCS = (sequence + 56.0) / 112.0 * 100.0 + 1.0

    # --- scalar index / weight preparation ----------------------------------
    coords = sequence_mapCS.reshape(-1, 2)
    batch = jnp.repeat(episode_idx.astype(jnp.int32), Td)   # repeat_interleave
    # guard: an out-of-range episode index would otherwise be a silent OOB read
    batch = jnp.clip(batch, 0, B - 1)
    pad_n = N_pad - N
    if pad_n:
        # pad with a safe in-range coordinate; padded results are discarded
        coords = jnp.concatenate(
            [coords, jnp.full((pad_n, 2), 1.0, jnp.float32)], axis=0)
        batch = jnp.concatenate([batch, jnp.zeros((pad_n,), jnp.int32)], axis=0)

    x = coords[:, 0]
    y = coords[:, 1]
    # The PyTorch module hard-codes clamp(., 0, 101); clamping x / y to their
    # own padded extents is identical for the module's square 100x100 scene.
    x1 = jnp.clip(jnp.floor(x), 0.0, float(Wp - 1))
    x2 = jnp.clip(jnp.ceil(x), 0.0, float(Wp - 1))
    y1 = jnp.clip(jnp.floor(y), 0.0, float(Hp - 1))
    y2 = jnp.clip(jnp.ceil(y), 0.0, float(Hp - 1))
    x1i = x1.astype(jnp.int32)
    x2i = x2.astype(jnp.int32)
    y1i = y1.astype(jnp.int32)
    y2i = y2.astype(jnp.int32)

    rows1 = batch * Hp + y1i                  # linearized row of y1
    rows2 = batch * Hp + y2i                  # linearized row of y2 (= rows1 or rows1+1)
    # one contiguous 2-row DMA window per point, clamped to stay in range
    row_start = jnp.minimum(rows1, B * Hp - 2)
    o1 = (rows1 - row_start).astype(jnp.float32)   # 0/1: window row holding y1
    o2 = (rows2 - row_start).astype(jnp.float32)   # 0/1: window row holding y2

    w11 = (x2 - x) * (y2 - y)
    w21 = (x - x1) * (y2 - y)
    w12 = (x2 - x) * (y - y1)
    w22 = (x - x1) * (y - y1)
    # fold (row-select, column-select, bilinear weight) into 4 scalars / point
    wa1 = w11 * (1.0 - o1) + w21 * (1.0 - o2)   # window row 0, column x1
    wa2 = w12 * (1.0 - o1) + w22 * (1.0 - o2)   # window row 0, column x2
    wb1 = w11 * o1 + w21 * o2                   # window row 1, column x1
    wb2 = w12 * o1 + w22 * o2                   # window row 1, column x2

    idx = jnp.stack([row_start, x1i, x2i], axis=0)                    # (3, N_pad) i32
    wts = jnp.stack([wa1, wa2, wb1, wb2], axis=0).astype(jnp.float32)  # (4, N_pad)

    # --- constant-pad (F.pad) + lane pad, relayout NCHW -> [(b*Hp+y), Ce, x] -
    fm_pad = jnp.pad(feature_map,
                     ((0, 0), (0, 0), (1, 1), (1, 1 + (Wp_pad - Wp))),
                     constant_values=oom_val)
    fm_lin = jnp.transpose(fm_pad, (0, 2, 1, 3)).reshape(B * Hp, Ce, Wp_pad)

    # --- Pallas kernel: gather + bilinear interpolation ----------------------
    out_t = pl.pallas_call(
        _gather_interp_kernel,
        out_shape=jax.ShapeDtypeStruct((Ce, N_pad), jnp.float32),
        grid=(n_tiles,),
        in_specs=[
            pl.BlockSpec(memory_space=pltpu.MemorySpace.SMEM),   # idx (scalars)
            pl.BlockSpec(memory_space=pltpu.MemorySpace.SMEM),   # wts (scalars)
            pl.BlockSpec(memory_space=pl.ANY),                   # feature map in HBM
        ],
        out_specs=pl.BlockSpec((Ce, tile), lambda t: (0, t)),
        scratch_shapes=[
            pltpu.VMEM((2, 2, Ce, Wp_pad), jnp.float32),         # double-buffered rows
            pltpu.SemaphoreType.DMA((2,)),
        ],
        compiler_params=pltpu.CompilerParams(
            dimension_semantics=("parallel",)),
    )(idx, wts, fm_lin)

    # layout plumbing: (Ce, N_pad) -> (A, Td, Ce)
    local_feature_bt = jnp.transpose(out_t[:, :N]).reshape(A, Td, Ce)
    return local_feature_bt, sequence_mapCS


# ---------------------------------------------------------------------------
# Pure-JAX reference mirroring the PyTorch forward (for correctness check).
# ---------------------------------------------------------------------------
def _reference(episode_idx, sequence, feature_map, oom_val):
    A, Td, _ = sequence.shape
    B, Ce, H, W = feature_map.shape
    fm_pad = jnp.pad(feature_map, ((0, 0), (0, 0), (1, 1), (1, 1)),
                     constant_values=oom_val)
    mapcs = (sequence + 56.0) / 112.0 * 100.0 + 1.0
    mb = mapcs.reshape(-1, 2)
    x = mb[:, 0:1]
    y = mb[:, 1:2]
    fl = jnp.clip(jnp.floor(mb), 0.0, 101.0)
    ce = jnp.clip(jnp.ceil(mb), 0.0, 101.0)
    x1, y1 = fl[:, 0:1], fl[:, 1:2]
    x2, y2 = ce[:, 0:1], ce[:, 1:2]
    x1i = x1[:, 0].astype(jnp.int32)
    x2i = x2[:, 0].astype(jnp.int32)
    y1i = y1[:, 0].astype(jnp.int32)
    y2i = y2[:, 0].astype(jnp.int32)
    bi = jnp.repeat(episode_idx.astype(jnp.int32), Td)
    q11 = fm_pad[bi, :, y1i, x1i]
    q12 = fm_pad[bi, :, y1i, x2i]
    q21 = fm_pad[bi, :, y2i, x1i]
    q22 = fm_pad[bi, :, y2i, x2i]
    lf = (q11 * ((x2 - x) * (y2 - y)) + q21 * ((x - x1) * (y2 - y))
          + q12 * ((x2 - x) * (y - y1)) + q22 * ((x - x1) * (y - y1)))
    return lf.reshape(A, Td, Ce), mapcs


if __name__ == "__main__":
    key = jax.random.PRNGKey(0)
    k1, k2, k3 = jax.random.split(key, 3)

    A, Td = 5, 30               # 150 points -> 2 tiles of 128 (exercises the grid)
    B, Ce = 2, 4                # feature-map batch, channels
    scene = 100                 # scene_size (module hard-codes 100)

    episode_idx = jax.random.randint(k3, (A,), 0, B, dtype=jnp.int32)
    # spread coords so some points land outside the map (exercise clamping)
    sequence = jax.random.uniform(k1, (A, Td, 2), jnp.float32, -70.0, 70.0)
    feature_map = jax.random.normal(k2, (B, Ce, scene, scene), jnp.float32)
    oom_val = -5.0

    local_feat, seq_mapcs = bilinear_interpolation(
        episode_idx, sequence, feature_map, oom_val)
    jax.block_until_ready((local_feat, seq_mapcs))

    ref_feat, ref_mapcs = _reference(episode_idx, sequence, feature_map, oom_val)

    assert local_feat.shape == (A, Td, Ce)
    assert seq_mapcs.shape == (A, Td, 2)
    assert jnp.allclose(seq_mapcs, ref_mapcs, atol=1e-5, rtol=1e-5)
    assert jnp.allclose(local_feat, ref_feat, atol=1e-4, rtol=1e-4)

    print("KERNEL_OK")
</pallas_src>

<mosaic_0001>
module attributes {stable_mosaic.version = 11 : i64} {
  func.func @_gather_interp_kernel(%arg0: i32, %arg1: memref<3x256xi32, #tpu.memory_space<smem>>, %arg2: memref<4x256xf32, #tpu.memory_space<smem>>, %arg3: memref<204x4x128xf32, #tpu.memory_space<any>>, %arg4: memref<4x128xf32, #tpu.memory_space<vmem>>, %arg5: memref<2x2x4x128xf32, #tpu.memory_space<vmem>>, %arg6: memref<2x!tpu.dma_semaphore, #tpu.memory_space<semaphore_mem>>) attributes {dimension_semantics = [#tpu.dimension_semantics<parallel>], iteration_bounds = array<i64: 2>, scalar_prefetch = 0 : i64, scratch_operands = 2 : i64, tpu.core_type = #tpu.core_type<tc>, window_params = [{transform_indices = @transform_0, window_bounds = array<i64: 3, 256>}, {transform_indices = @transform_1, window_bounds = array<i64: 4, 256>}, {}, {transform_indices = @transform_3, window_bounds = array<i64: 4, 128>}]} {
    %c128_i32 = arith.constant 128 : i32
    %0 = arith.muli %arg0, %c128_i32 : i32
    %c0_i32 = arith.constant 0 : i32
    %1 = arith.addi %0, %c0_i32 : i32
    %c0 = arith.constant 0 : index
    %2 = arith.index_cast %1 : i32 to index
    %3 = memref.load %arg1[%c0, %2] : memref<3x256xi32, #tpu.memory_space<smem>>
    %c0_i32_0 = arith.constant 0 : i32
    %c0_i32_1 = arith.constant 0 : i32
    %c0_i32_2 = arith.constant 0 : i32
    %c0_i32_3 = arith.constant 0 : i32
    %4 = tpu.memref_slice %arg3[%3, %c0_i32_2, %c0_i32_3] : memref<204x4x128xf32, #tpu.memory_space<any>> -> memref<2x4x128xf32, #tpu.memory_space<any>>
    %c0_i32_4 = arith.constant 0 : i32
    %c0_i32_5 = arith.constant 0 : i32
    %c0_i32_6 = arith.constant 0 : i32
    %5 = tpu.memref_slice %arg5[%c0_i32_0, %c0_i32_4, %c0_i32_5, %c0_i32_6] : memref<2x2x4x128xf32, #tpu.memory_space<vmem>> -> memref<1x2x4x128xf32, #tpu.memory_space<vmem>>
    %6 = tpu.memref_squeeze %5 : memref<1x2x4x128xf32, #tpu.memory_space<vmem>> -> memref<2x4x128xf32, #tpu.memory_space<vmem>>
    %7 = tpu.memref_slice %arg6[%c0_i32_1] : memref<2x!tpu.dma_semaphore, #tpu.memory_space<semaphore_mem>> -> memref<1x!tpu.dma_semaphore, #tpu.memory_space<semaphore_mem>>
    %8 = tpu.memref_squeeze %7 : memref<1x!tpu.dma_semaphore, #tpu.memory_space<semaphore_mem>> -> memref<!tpu.dma_semaphore, #tpu.memory_space<semaphore_mem>>
    tpu.enqueue_dma source(%4 : memref<2x4x128xf32, #tpu.memory_space<any>>) target(%6 : memref<2x4x128xf32, #tpu.memory_space<vmem>>) target_semaphore(%8 : memref<!tpu.dma_semaphore, #tpu.memory_space<semaphore_mem>>)
    %cst = arith.constant 0.000000e+00 : f32
    %9 = vector.broadcast %cst : f32 to vector<4x128xf32>
    %c0_7 = arith.constant 0 : index
    %c0_8 = arith.constant 0 : index
    %10 = vector.load %arg4[%c0_7, %c0_8] : memref<4x128xf32, #tpu.memory_space<vmem>>, vector<4x128xf32>
    tpu.vector_store %arg4[%c0_7, %c0_8], %9 {strides = array<i32>} : memref<4x128xf32, #tpu.memory_space<vmem>>, vector<4x128xf32>,
    %11 = tpu.iota {dimensions = array<i32: 1>} : vector<1x128xi32>
    %12 = tpu.iota {dimensions = array<i32: 1>} : vector<1x128xi32>
    %c0_i32_9 = arith.constant 0 : i32
    %c128_i32_10 = arith.constant 128 : i32
    %13 = arith.addi %c0_i32_9, %c128_i32_10 : i32
    %c1_i32 = arith.constant 1 : i32
    scf.for %arg7 = %c0_i32_9 to %13 step %c1_i32  : i32 {
      %c1_i32_12 = arith.constant 1 : i32
      %14 = arith.muli %arg7, %c1_i32_12 : i32
      %c0_i32_13 = arith.constant 0 : i32
      %15 = arith.addi %c0_i32_13, %14 : i32
      %c1_i32_14 = arith.constant 1 : i32
      %16 = arith.andi %15, %c1_i32_14 : i32
      %17 = arith.addi %0, %15 : i32
      %c1 = arith.constant 1 : index
      %18 = arith.index_cast %17 : i32 to index
      %19 = memref.load %arg1[%c1, %18] : memref<3x256xi32, #tpu.memory_space<smem>>
      %c2 = arith.constant 2 : index
      %20 = arith.index_cast %17 : i32 to index
      %21 = memref.load %arg1[%c2, %20] : memref<3x256xi32, #tpu.memory_space<smem>>
      %c0_15 = arith.constant 0 : index
      %22 = arith.index_cast %17 : i32 to index
      %23 = memref.load %arg2[%c0_15, %22] : memref<4x256xf32, #tpu.memory_space<smem>>
      %c1_16 = arith.constant 1 : index
      %24 = arith.index_cast %17 : i32 to index
      %25 = memref.load %arg2[%c1_16, %24] : memref<4x256xf32, #tpu.memory_space<smem>>
      %c2_17 = arith.constant 2 : index
      %26 = arith.index_cast %17 : i32 to index
      %27 = memref.load %arg2[%c2_17, %26] : memref<4x256xf32, #tpu.memory_space<smem>>
      %c3 = arith.constant 3 : index
      %28 = arith.index_cast %17 : i32 to index
      %29 = memref.load %arg2[%c3, %28] : memref<4x256xf32, #tpu.memory_space<smem>>
      %c0_i32_18 = arith.constant 0 : i32
      %c0_i32_19 = arith.constant 0 : i32
      %c0_i32_20 = arith.constant 0 : i32
      %30 = tpu.memref_slice %arg3[%c0_i32_18, %c0_i32_19, %c0_i32_20] : memref<204x4x128xf32, #tpu.memory_space<any>> -> memref<2x4x128xf32, #tpu.memory_space<any>>
      %c0_i32_21 = arith.constant 0 : i32
      %c0_i32_22 = arith.constant 0 : i32
      %c0_i32_23 = arith.constant 0 : i32
      %31 = tpu.memref_slice %arg5[%16, %c0_i32_21, %c0_i32_22, %c0_i32_23] : memref<2x2x4x128xf32, #tpu.memory_space<vmem>> -> memref<1x2x4x128xf32, #tpu.memory_space<vmem>>
      %32 = tpu.memref_squeeze %31 : memref<1x2x4x128xf32, #tpu.memory_space<vmem>> -> memref<2x4x128xf32, #tpu.memory_space<vmem>>
      %33 = tpu.memref_slice %arg6[%16] : memref<2x!tpu.dma_semaphore, #tpu.memory_space<semaphore_mem>> -> memref<1x!tpu.dma_semaphore, #tpu.memory_space<semaphore_mem>>
      %34 = tpu.memref_squeeze %33 : memref<1x!tpu.dma_semaphore, #tpu.memory_space<semaphore_mem>> -> memref<!tpu.dma_semaphore, #tpu.memory_space<semaphore_mem>>
      tpu.wait_dma2 semaphore(%34 : memref<!tpu.dma_semaphore, #tpu.memory_space<semaphore_mem>>) src(%30 : memref<2x4x128xf32, #tpu.memory_space<any>>) dst(%32 : memref<2x4x128xf32, #tpu.memory_space<vmem>>)
      %c1_i32_24 = arith.constant 1 : i32
      %35 = arith.addi %15, %c1_i32_24 : i32
      %c128_i32_25 = arith.constant 128 : i32
      %36 = arith.cmpi slt, %35, %c128_i32_25 : i32
      %37 = arith.extui %36 : i1 to i32
      %c0_i32_26 = arith.constant 0 : i32
      %38 = arith.cmpi ne, %37, %c0_i32_26 : i32
      scf.if %38 {
        %c1_i32_35 = arith.constant 1 : i32
        %81 = arith.addi %15, %c1_i32_35 : i32
        %c1_i32_36 = arith.constant 1 : i32
        %82 = arith.subi %c1_i32_36, %16 : i32
        %83 = arith.addi %0, %81 : i32
        %c0_37 = arith.constant 0 : index
        %84 = arith.index_cast %83 : i32 to index
        %85 = memref.load %arg1[%c0_37, %84] : memref<3x256xi32, #tpu.memory_space<smem>>
        %c0_i32_38 = arith.constant 0 : i32
        %c0_i32_39 = arith.constant 0 : i32
        %86 = tpu.memref_slice %arg3[%85, %c0_i32_38, %c0_i32_39] : memref<204x4x128xf32, #tpu.memory_space<any>> -> memref<2x4x128xf32, #tpu.memory_space<any>>
        %c0_i32_40 = arith.constant 0 : i32
        %c0_i32_41 = arith.constant 0 : i32
        %c0_i32_42 = arith.constant 0 : i32
        %87 = tpu.memref_slice %arg5[%82, %c0_i32_40, %c0_i32_41, %c0_i32_42] : memref<2x2x4x128xf32, #tpu.memory_space<vmem>> -> memref<1x2x4x128xf32, #tpu.memory_space<vmem>>
        %88 = tpu.memref_squeeze %87 : memref<1x2x4x128xf32, #tpu.memory_space<vmem>> -> memref<2x4x128xf32, #tpu.memory_space<vmem>>
        %89 = tpu.memref_slice %arg6[%82] : memref<2x!tpu.dma_semaphore, #tpu.memory_space<semaphore_mem>> -> memref<1x!tpu.dma_semaphore, #tpu.memory_space<semaphore_mem>>
        %90 = tpu.memref_squeeze %89 : memref<1x!tpu.dma_semaphore, #tpu.memory_space<semaphore_mem>> -> memref<!tpu.dma_semaphore, #tpu.memory_space<semaphore_mem>>
        tpu.enqueue_dma source(%86 : memref<2x4x128xf32, #tpu.memory_space<any>>) target(%88 : memref<2x4x128xf32, #tpu.memory_space<vmem>>) target_semaphore(%90 : memref<!tpu.dma_semaphore, #tpu.memory_space<semaphore_mem>>)
      } else {
      }
      %39 = arith.index_cast %16 : i32 to index
      %c0_27 = arith.constant 0 : index
      %c0_28 = arith.constant 0 : index
      %c0_29 = arith.constant 0 : index
      %40 = vector.load %arg5[%39, %c0_27, %c0_28, %c0_29] : memref<2x2x4x128xf32, #tpu.memory_space<vmem>>, vector<1x2x4x128xf32>
      %41 = vector.shape_cast %40 : vector<1x2x4x128xf32> to vector<2x4x128xf32>
      %42 = vector.broadcast %19 : i32 to vector<1x128xi32>
      %43 = arith.cmpi eq, %11, %42 : vector<1x128xi32>
      %44 = arith.extui %43 : vector<1x128xi1> to vector<1x128xi32>
      %45 = arith.sitofp %44 : vector<1x128xi32> to vector<1x128xf32>
      %46 = vector.broadcast %21 : i32 to vector<1x128xi32>
      %47 = arith.cmpi eq, %11, %46 : vector<1x128xi32>
      %48 = arith.extui %47 : vector<1x128xi1> to vector<1x128xi32>
      %49 = arith.sitofp %48 : vector<1x128xi32> to vector<1x128xf32>
      %50 = vector.broadcast %23 : f32 to vector<1x128xf32>
      %51 = arith.mulf %50, %45 : vector<1x128xf32>
      %52 = vector.broadcast %25 : f32 to vector<1x128xf32>
      %53 = arith.mulf %52, %49 : vector<1x128xf32>
      %54 = arith.addf %51, %53 : vector<1x128xf32>
      %55 = vector.broadcast %27 : f32 to vector<1x128xf32>
      %56 = arith.mulf %55, %45 : vector<1x128xf32>
      %57 = vector.broadcast %29 : f32 to vector<1x128xf32>
      %58 = arith.mulf %57, %49 : vector<1x128xf32>
      %59 = arith.addf %56, %58 : vector<1x128xf32>
      %60 = vector.extract_strided_slice %41 {offsets = [0, 0, 0], sizes = [1, 4, 128], strides = [1, 1, 1]} : vector<2x4x128xf32> to vector<1x4x128xf32>
      %61 = vector.shape_cast %60 : vector<1x4x128xf32> to vector<4x128xf32>
      %62 = vector.broadcast %54 : vector<1x128xf32> to vector<4x128xf32>
      %63 = arith.mulf %61, %62 : vector<4x128xf32>
      %64 = vector.extract_strided_slice %41 {offsets = [1, 0, 0], sizes = [1, 4, 128], strides = [1, 1, 1]} : vector<2x4x128xf32> to vector<1x4x128xf32>
      %65 = vector.shape_cast %64 : vector<1x4x128xf32> to vector<4x128xf32>
      %66 = vector.broadcast %59 : vector<1x128xf32> to vector<4x128xf32>
      %67 = arith.mulf %65, %66 : vector<4x128xf32>
      %68 = arith.addf %63, %67 : vector<4x128xf32>
      %cst_30 = arith.constant dense<0.000000e+00> : vector<4xf32>
      %69 = vector.multi_reduction <add>, %68, %cst_30 [1] : vector<4x128xf32> to vector<4xf32>
      %70 = vector.shape_cast %69 : vector<4xf32> to vector<4x1xf32>
      %71 = vector.broadcast %15 : i32 to vector<1x128xi32>
      %72 = arith.cmpi eq, %12, %71 : vector<1x128xi32>
      %73 = arith.extui %72 : vector<1x128xi1> to vector<1x128xi32>
      %74 = arith.sitofp %73 : vector<1x128xi32> to vector<1x128xf32>
      %c0_31 = arith.constant 0 : index
      %c0_32 = arith.constant 0 : index
      %75 = vector.load %arg4[%c0_31, %c0_32] : memref<4x128xf32, #tpu.memory_space<vmem>>, vector<4x128xf32>
      %76 = vector.broadcast %70 : vector<4x1xf32> to vector<4x128xf32>
      %77 = vector.broadcast %74 : vector<1x128xf32> to vector<4x128xf32>
      %78 = arith.mulf %76, %77 : vector<4x128xf32>
      %79 = arith.addf %75, %78 : vector<4x128xf32>
      %c0_33 = arith.constant 0 : index
      %c0_34 = arith.constant 0 : index
      %80 = vector.load %arg4[%c0_33, %c0_34] : memref<4x128xf32, #tpu.memory_space<vmem>>, vector<4x128xf32>
      tpu.vector_store %arg4[%c0_33, %c0_34], %79 {strides = array<i32>} : memref<4x128xf32, #tpu.memory_space<vmem>>, vector<4x128xf32>,
    }
    %c128_i32_11 = arith.constant 128 : i32
    return
  }
  func.func @transform_0(%arg0: i32) -> (i32, i32) {
    %c0_i32 = arith.constant 0 : i32
    %c0_i32_0 = arith.constant 0 : i32
    %c0_i32_1 = arith.constant 0 : i32
    return %c0_i32, %c0_i32_0 : i32, i32
  }
  func.func @transform_1(%arg0: i32) -> (i32, i32) {
    %c0_i32 = arith.constant 0 : i32
    %c0_i32_0 = arith.constant 0 : i32
    %c0_i32_1 = arith.constant 0 : i32
    return %c0_i32, %c0_i32_0 : i32, i32
  }
  func.func @transform_3(%arg0: i32) -> (i32, i32) {
    %c0_i32 = arith.constant 0 : i32
    %c0_i32_0 = arith.constant 0 : i32
    return %c0_i32, %arg0 : i32, i32
  }
}

</mosaic_0001>

<bundles_post_ra>
// kernel: tpu_custom_call.1
= control target key start
LH: loop header
LB: loop body
LE: loop exit
PB: predicated region body
PF: predicated region fallthrough
CT: control target
= control target key end

     0   :  { %s879_s0 = inlined_call_operand.hbm [shape: s32[3,256], index: 0, kind: input, shape index: {}]   ;;  %s880_s1 = inlined_call_operand.hbm [shape: f32[4,256], index: 1, kind: input, shape index: {}]   ;;  %s881_s2 = inlined_call_operand.hbm [shape: f32[204,4,128], index: 2, kind: input, shape index: {}]   ;;  %s882_s3 = inlined_call_operand.hbm [shape: f32[4,256], index: 3, kind: output, shape index: {}]  }
   0x1   :  { %886 = sst [smem:[#allocation23_spill]] %s879_s0 }
   0x2   :  { %887 = sst [smem:[#allocation24_spill]] %s880_s1 }
   0x3   :  { %8 = vsyncpa [#allocation6], 0 }
   0x4   :  { %9 = vsyncpa [#allocation8], 0 }
   0x5   :  { %10 = vsyncpa [#allocation5], 0 }
   0x6   :  { %12 = vsyncpa [#allocation5 + $0x1], 0  ;;  %s680_s12 = smov 0   ;;  %s682_s13 = smov 0  }
   0x7   :  { %s684_s14 = smov 0   ;;  %s686_s15 = smov 0  }
   0x8 LB: > { %888 = sst [smem:[#allocation21_spill]] %s645_s14  ;;  %s701_s16 = sadd.s32 4294967295, %s649_s15   ;;  %s649_s15 = sphi %s686_s15, %s901_s15   ;;  %s645_s14 = sphi %s684_s14, %s898_s14   ;;  %s641_s13 = sphi %s682_s13, %s900_s13   ;;  %s637_s12 = sphi %s680_s12, %s899_s12  }
   0x9   : > { %s389_s17 = sadd.s32 4294967294, %s649_s15   ;;  %s705_s18 = sadd.s32 1, %s649_s15  }
   0xa   : > { %s67_s19 = sadd.s32 1, %s645_s14  ;;  %s64_s20 = ssub.s32 %s649_s15, %s705_s18 }
   0xb   : > { %p77_p0 = scmp.ne.s32.totalorder %s645_s14, %s641_s13  ;;  %p65_p1 = scmp.eq.s32.totalorder %s64_s20, 0 }
   0xc   : > { %p78_p2 = scmp.eq.s32.totalorder %s701_s16, 1  ;;  %p83_p3 = scmp.ne.s32.totalorder %s641_s13, %s637_s12 }
   0xd   : > { %p84_p4 = scmp.eq.s32.totalorder %s389_s17, 1  ;;  %p390_p7 = scmp.ge.s32.totalorder %s649_s15, 1 }
   0xe   : > { %s716_s21 = scalar_select %p65_p1, %s645_s14, %s67_s19  }
   0xf   : > { %p718_p5 = por %p78_p2, %p77_p0  ;;  %p722_p6 = por %p84_p4, %p83_p3 }
  0x10   : > { %889 = sst [smem:[#allocation22_spill]] %s716_s21  ;;  %p91_p8 = scmp.lt.s32.totalorder %s649_s15, 3 }
  0x11   : > { %p440_p9 = scmp.eq.s32.totalorder %s701_s16, 0  ;;  %s892_s0 = sld [smem:[#allocation23_spill]] }
  0x12   : > { %p92_p10 = pnand %p390_p7, %p91_p8  ;;  %s893_s1 = sld [smem:[#allocation24_spill]] }
  0x13   : > { %s655_s30 = smov [#allocation4]   ;;  %s656_s4 = smov [#allocation7]  }
  0x14   : > { %p429_p11 = pneg %p92_p10 }
  0x16   : > { %p430_p12 = pnand %p440_p9, %p429_p11  ;;  %126 = sbr.rel (%p92_p10) target bundleno = 232 (0xe8), region = 28 }
  0x17   : > { %s103_s26 = sshll.u32 %s892_s0, 4  ;;  %s104_s26 = int_to_ptr.hbm [resolvable:$true] %s103_s26 }
  0x18   : > { %s113_s29 = sshll.u32 %s893_s1, 4  ;;  %s114_s29 = int_to_ptr.hbm [resolvable:$true] %s113_s29 }
  0x19   : > { %432 = dma.hbm_to_smem (!%p430_p12), %s104_s26, 128, %s655_s30, [#allocation6]  }
  0x1a   : > { %435 = dma.hbm_to_smem (!%p430_p12), %s114_s29, 128, %s656_s4, [#allocation8]  }
  0x1b   : > { %622 = dma.done.wait (%p440_p9), [#allocation6], 128  }
  0x1c   : > { %624 = vsyncadd (%p440_p9), [#allocation6], 4294967168 }
  0x1d   : > { %626 = dma.done.wait (%p440_p9), [#allocation8], 128  }
  0x1e   : > { %628 = vsyncadd (%p440_p9), [#allocation8], 4294967168 }
  0x1f   : > { %138 = sfence }
  0x20   : > { %s746_s5 = sshll.u32 %s701_s16, 7  ;;  %v174_v0 = vlaneseq  ;;  %s883_s11 = sand.u32 1, %s641_s13   ;;  %v657_v2 = vmov 0.0  }
  0x21   : > { %s151_s6 = sshra.s32 %s746_s5, 7  ;;  %s155_s7 = sand.u32 127, %s746_s5 }
  0x22   : > { %s398_s8 = sshll.u32 %s151_s6, 9  ;;  %v750_v1 = vand.u32 127, %v174_v0  ;;  %s396_s17 = sshll.u32 %s883_s11, 2 }
  0x23   : > { %s156_s9 = sadd.s32 %s398_s8, %s155_s7  ;;  %s755_s19 = scalar_lea.vmem [#allocation9], %s396_s17 }
  0x24   : > { %s157_s10 = sld [smem:[#allocation4 + %s156_s9]]  ;;  %173 = vst [vmem:[%s755_s19] sm:$0xf] %v657_v2  ;;  %s658_s20 = smov [#allocation2]  }
  0x25   : > { %s169_s24 = sshll.u32 %s658_s20, 4  ;;  %s884_s8 = scalar_lea.hbm %s881_s2, 816  ;;  %s170_s24 = int_to_ptr.vmem [resolvable:$true] %s169_s24 }
  0x2a   : > { %s399_s25 = sshll.u32 %s157_s10, 2 }
  0x2b   : > { %s159_s28 = scalar_lea.hbm %s881_s2, %s399_s25 }
  0x2c   : > { %s167_s29 = sshll.u32 %s159_s28, 4  ;;  %s168_s29 = int_to_ptr.hbm [resolvable:$true] %s167_s29 }
  0x2d   : > { %s521_s30 = sshra.s32 %s168_s29, 4  ;;  %s522_s30 = int_to_ptr.hbm [resolvable:$true] %s521_s30 }
  0x2e   : > { %s523_s4 = scalar_lea.hbm %s522_s30, 8  ;;  %p526_p0 = scmp.lt.s32.totalorder %s522_s30, %s881_s2 }
  0x2f   : > { %p524_p13 = scmp.ne.s32.totalorder %s522_s30, %s523_s4  ;;  %p527_p1 = scmp.lt.s32.totalorder %s884_s8, %s523_s4 }
  0x31   : > { %p528_p2 = por %p527_p1, %p526_p0 }
  0x33   : > { %p529_p3 = pnand %p528_p2, %p524_p13 }
  0x35   : > { %532 = shalt.err (!%p529_p3)  }
  0x36   : > { %172 = dma.hbm_to_vmem [thread:$0]  %s168_s29, 128, %s170_s24, [#allocation3] }
  0x37   : > { %s771_s25 = smov 0  }
  0x38 LB: >> { %s777_s26 = sand.u32 1, %s653_s25  ;;  %s183_s27 = sadd.s32 %s653_s25, %s746_s5  ;;  %s653_s25 = sphi %s771_s25, %s895_s25  }
  0x39   : >> { %s184_s28 = sshra.s32 %s183_s27, 7  ;;  %s188_s30 = sand.u32 127, %s183_s27 }
  0x3a   : >> { %s400_s4 = sshll.u32 %s184_s28, 9  ;;  %s189_s6 = sadd.s32 128, %s188_s30 }
  0x3b   : >> { %s190_s24 = sadd.s32 %s400_s4, %s189_s6  ;;  %s192_s29 = sadd.s32 256, %s188_s30 }
  0x3c   : >> { %s781_s7 = sld [smem:[#allocation4 + %s190_s24]]  ;;  %s193_s9 = sadd.s32 %s400_s4, %s192_s29 }
  0x3d   : >> { %s783_s17 = sld [smem:[#allocation4 + %s193_s9]]  ;;  %s195_s10 = sadd.s32 %s400_s4, %s188_s30 }
  0x3e   : >> { %s785_s20 = sld [smem:[#allocation7 + %s195_s10]]  ;;  %s199_s11 = sadd.s32 384, %s188_s30 }
  0x3f   : >> { %s787_s8 = sld [smem:[#allocation7 + %s190_s24]]  ;;  %s200_s0 = sadd.s32 %s400_s4, %s199_s11 }
  0x40   : >> { %s789_s1 = sld [smem:[#allocation7 + %s193_s9]]  ;;  %s401_s27 = sshll.u32 %s777_s26, 3 }
  0x41   : >> { %s792_s28 = sld [smem:[#allocation7 + %s200_s0]]  ;;  %s794_s21 = scalar_lea.vmem [#allocation2], %s401_s27 }
  0x42   : >> { %s204_s6 = scalar_lea.sflag [#allocation3], %s777_s26 }
  0x43   : >> { %629 = dma.done.wait %s204_s6, 128 }
  0x44   : >> { %630 = vsyncadd %s204_s6, 4294967168  ;;  %s798_s29 = sadd.s32 1, %s653_s25   ;;  %s214_s0 = ssub.s32 1, %s777_s26  ;;  %v243_v3 = vstv %s781_s7  ;;  %v247_v4 = vstv %s783_s17  ;;  %v251_v5 = vstv %s785_s20  ;;  %v659_v7 = vmov 0.0  }
  0x45   : >> { %p402_p4 = scmp.ge.s32.totalorder %s798_s29, 128  ;;  %p444_p7 = scmp.lt.s32.totalorder %s798_s29, 128  ;;  %vm244_vm0 = vcmp.eq.s32.totalorder %v750_v1, %v243_v3  ;;  %vm248_vm1 = vcmp.eq.s32.totalorder %v750_v1, %v247_v4  ;;  %v253_v6 = vstv %s787_s8 }
  0x46   : >> { %s215_s11 = sadd.s32 %s746_s5, %s798_s29  ;;  %s405_s10 = sshll.u32 %s214_s0, 3  ;;  %v406_v8 = vsel %vm244_vm0, 1.0, %v659_v7  ;;  %v407_v9 = vsel %vm248_vm1, 1.0, %v659_v7  ;;  %v256_v10 = vstv %s789_s1 }
  0x47   : >> { %s216_s30 = sshra.s32 %s215_s11, 7  ;;  %s220_s4 = sand.u32 127, %s215_s11  ;;  %v258_v11 = vstv %s792_s28 }
  0x48   : >> { %s403_s24 = sshll.u32 %s216_s30, 9  ;;  %s226_s14 = scalar_lea.vmem [#allocation2], %s405_s10 }
  0x49   : >> { %s221_s9 = sadd.s32 %s403_s24, %s220_s4  ;;  %s811_s26 = sshll.u32 %s226_s14, 4  ;;  %s238_s26 = int_to_ptr.vmem [resolvable:$true] %s811_s26 }
  0x4a   : >> { %s424_s27 = scalar_select %p444_p7, [#allocation4], [#allocation16] }
  0x4b   : >> { %s903_s9 = smov (!%p444_p7, %s221_s9), 0  ;;  %s227_s7 = scalar_lea.sflag [#allocation3], %s214_s0 }
  0x4c   : >> { %s222_s6 = sld [smem:[%s424_s27 + %s903_s9]] }
  0x52   : >> { %s404_s11 = sshll.u32 %s222_s6, 2  ;;  %s894_s6 = scalar_lea.hbm %s881_s2, 816 }
  0x53   : >> { %s224_s24 = scalar_lea.hbm %s881_s2, %s404_s11 }
  0x54   : >> { %s235_s14 = sshll.u32 %s224_s24, 4  ;;  %s236_s14 = int_to_ptr.hbm [resolvable:$true] %s235_s14 }
  0x55   : >> { %s545_s17 = sshra.s32 %s236_s14, 4  ;;  %s546_s17 = int_to_ptr.hbm [resolvable:$true] %s545_s17 }
  0x56   : >> { %s547_s9 = scalar_lea.hbm %s546_s17, 8  ;;  %p552_p11 = scmp.lt.s32.totalorder %s546_s17, %s881_s2 }
  0x57   : >> { %p548_p8 = scmp.ne.s32.totalorder %s546_s17, %s547_s9  ;;  %p553_p12 = scmp.lt.s32.totalorder %s894_s6, %s547_s9 }
  0x59   : >> { %p549_p9 = pnand %p548_p8, %p444_p7  ;;  %p554_p13 = por %p553_p12, %p552_p11 }
  0x5b   : >> { %p550_p10 = pneg %p549_p9 }
  0x5d   : >> { %p555_p0 = pnand %p554_p13, %p550_p10 }
  0x5f   : >> { %558 = shalt.err (!%p555_p0)  }
  0x60   : >> { %426 = dma.hbm_to_vmem [thread:$0]  (%p444_p7), %s236_s14, 128, %s238_s26, %s227_s7  ;;  %v252_v12 = vmul.f32 %v406_v8, %v251_v5  ;;  %v254_v13 = vmul.f32 %v407_v9, %v253_v6  ;;  %v257_v14 = vmul.f32 %v406_v8, %v256_v10  ;;  %v259_v15 = vmul.f32 %v407_v9, %v258_v11  ;;  %v272_v27 = vld [vmem:[%s755_s19] sm:$0xf] }
  0x61   : >> { %v241_v18 = vld [vmem:[%s794_s21] sm:$0xf]  ;;  %v242_v19 = vld [vmem:[%s794_s21 + $0x4] sm:$0xf]  ;;  %vm264_vm2 = vcmask 1043456   ;;  %v268_v24 = vstv %s653_s25  ;;  %s895_s25 = smov %s798_s29  ;;  %s410_s1 = sshll.u32 (%p402_p4), %s701_s16, 2 }
  0x62   : >> { %v255_v16 = vadd.f32 %v254_v13, %v252_v12  ;;  %v260_v17 = vadd.f32 %v259_v15, %v257_v14  ;;  %vm269_vm3 = vcmp.eq.s32.totalorder %v750_v1, %v268_v24  ;;  %s287_s28 = scalar_lea.hbm (%p402_p4), %s882_s3, %s410_s1  ;;  %s289_s0 = sshll.u32 (%p402_p4), %s755_s19, 4  ;;  %s290_s0 = int_to_ptr.vmem [resolvable:$true] %s289_s0 }
  0x63   : >> { %v408_v25 = vsel %vm269_vm3, 1.0, %v659_v7  ;;  %s291_s26 = sshll.u32 (%p402_p4), %s287_s28, 4  ;;  %s896_s11 = sand.u32 (%p402_p4), 1, %s641_s13   ;;  %s292_s26 = int_to_ptr.hbm [resolvable:$true] %s291_s26 }
  0x64   : >> { %v261_v20 = vmul.f32 %v255_v16, %v241_v18  ;;  %v262_v21 = vmul.f32 %v260_v17, %v242_v19  ;;  %s277_s30 = scalar_lea.sflag (%p402_p4), [#allocation5], %s896_s11  ;;  %s587_s4 = sshra.s32 (%p402_p4), %s292_s26, 4  ;;  %s588_s4 = int_to_ptr.hbm [resolvable:$true] %s587_s4 }
  0x65   : > { %s589_s24 = scalar_lea.hbm (%p402_p4), %s588_s4, 4  ;;  %s593_s16 = scalar_lea.hbm (%p402_p4), %s882_s3, 8 }
  0x66   : >> { %v263_v22 = vadd.f32 %v262_v21, %v261_v20  ;;  %p590_p1 = scmp.ne.s32.totalorder (%p402_p4), %s588_s4, %s589_s24  ;;  %p595_p7 = scmp.lt.s32.totalorder (%p402_p4), %s593_s16, %s589_s24 }
  0x68   : >> { %v265_v23 = vsel %vm264_vm2, %v263_v22, 0.0  ;;  %p591_p2 = pnand (%p402_p4), %p590_p1, %p718_p5 }
  0x69   : >> { %266 = vadd.xlane.f32.xlu0 %v265_v23 }
  0x6a   : > { %p592_p3 = pneg (%p402_p4), %p591_p2 }
  0xdc   : >> { %v267_v26 = vpop.xlane.xlu0 %266 }
  0xdd   : >> { %v273_v28 = vmul.f32 %v408_v25, %v267_v26  ;;  %180 = sbr.rel (!%p402_p4) target bundleno = 56 (0x38), region = 95  ;;  %p594_p4 = scmp.lt.s32.totalorder (%p402_p4), %s588_s4, %s882_s3 }
  0xdf   : >> { %v274_v29 = vadd.f32 %v273_v28, %v272_v27 }
  0xe1   : >> { %275 = vst [vmem:[%s755_s19] sm:$0xf] %v274_v29 }
  0xe2   : > { %p596_p8 = por %p595_p7, %p594_p4 }
  0xe4   : > { %p597_p9 = pnand %p596_p8, %p592_p3 }
  0xe6   : > { %600 = shalt.err (!%p597_p9)
}
  0xe7   : > { %427 = dma.vmem_to_hbm [thread:$0]  (%p718_p5), %s290_s0, 64, %s292_s26, %s277_s30  }
  0xe8 PF: > { %p445_p10 = scmp.ge.s32.totalorder %s649_s15, 2  ;;  %s303_s19 = sand.u32 1, %s637_s12  }
  0xe9   : > { %s304_s17 = scalar_lea.sflag [#allocation5], %s303_s19 }
  0xea   : > { %p437_p11 = pnand %p445_p10, %p722_p6 }
  0xec   : > { %p438_p12 = pneg %p437_p11 }
  0xee   : > { %632 = dma.done.wait (%p438_p12), %s304_s17, 64  }
  0xef   : > { %634 = vsyncadd (%p438_p12), %s304_s17, 4294967232  ;;  %s897_s9 = sld [smem:[#allocation21_spill]]  ;;  %p15_p13 = scmp.ge.s32.totalorder %s705_s18, 4  }
  0xf0   : > { %s898_s14 = sld [smem:[#allocation22_spill]]  ;;  %s899_s12 = smov %s641_s13 }
  0xf1   : > { %s901_s15 = smov %s705_s18  ;;  %17 = sbr.rel (!%p15_p13) target bundleno = 8 (0x8), region = 106 }
  0xf5   : > { %s900_s13 = smov %s897_s9 }
  0xf6   :  { %310 = vsyncpa [#allocation5], 1 }
  0xf7   :  { %312 = vsyncpa [#allocation5 + $0x1], 1 }
  0xf8   :  { %313 = vsyncpa [#allocation6], 1 }
  0xf9   :  { %315 = vsyncpa [#allocation6 + $0x1], 1 }
  0xfa   :  { %316 = vsyncpa [#allocation8], 1 }
  0xfb   :  { %317 = vsyncmov [#allocation3] }
  0xfe   :  { %s318_s15 = vpop.sfrf %317 }
  0xff   :  { %p413_p5 = scmp.ne.s32.totalorder %s318_s15, 0 }
 0x101   :  { %322 = shalt.err (%p413_p5)  }
 0x102   :  { %324 = vsyncmov [#allocation3 + $0x1] }
 0x105   :  { %s325_s22 = vpop.sfrf %324 }
 0x106   :  { %p414_p6 = scmp.ne.s32.totalorder %s325_s22, 0 }
 0x108   :  { %329 = shalt.err (%p414_p6)  }

</bundles_post_ra>
